<compile_context>
chip_gen: v6e
topology: v6e:2x2x1
jax: 0.10.0
libtpu: 0.0.40
codegen_flags: <defaults>
</compile_context>

<pallas_src>
import functools
import math

import jax
import jax.numpy as jnp
from jax import lax
from jax.experimental import pallas as pl
from jax.experimental.pallas import tpu as pltpu


def _round_up(x: int, m: int) -> int:
    return (x + m - 1) // m * m


def _cdiv(a: int, b: int) -> int:
    return (a + b - 1) // b


def _gelu_f32(y, approximate):
    if approximate == "tanh":
        # 0.5 * x * (1 + tanh(sqrt(2/pi) * (x + 0.044715 * x^3)))
        # tanh hits the EUP slot -> essentially free next to the MXU.
        c = math.sqrt(2.0 / math.pi)
        return 0.5 * y * (1.0 + jnp.tanh(c * (y + 0.044715 * (y * y * y))))
    # exact GELU: 0.5 * x * (1 + erf(x / sqrt(2)))
    # (on v5e the erf polynomial is VALU work; prefer approximate="tanh" there)
    return 0.5 * y * (1.0 + lax.erf(y * (1.0 / math.sqrt(2.0))))


def _mxu_dot(x, w):
    # f32 operands: force the exact multi-pass MXU matmul; bf16: native path.
    prec = lax.Precision.HIGHEST if x.dtype == jnp.float32 else None
    return jnp.dot(x, w, precision=prec, preferred_element_type=jnp.float32)


def _gelu_linear_kernel(x_ref, w_ref, b_ref, o_ref, *, approximate):
    """Full-K mode: the whole reduction happens in one grid step."""
    y = _mxu_dot(x_ref[...], w_ref[...]) + b_ref[...].astype(jnp.float32)
    o_ref[...] = _gelu_f32(y, approximate).astype(o_ref.dtype)


def _gelu_linear_acc_kernel(x_ref, w_ref, b_ref, o_ref, acc_ref, *, approximate):
    """Tiled-K fallback: grid = (Mb, Nb, Kb); K is the last ('arbitrary') axis."""
    k = pl.program_id(2)
    nk = pl.num_programs(2)

    @pl.when(k == 0)
    def _():
        acc_ref[...] = jnp.zeros_like(acc_ref)

    total = acc_ref[...] + _mxu_dot(x_ref[...], w_ref[...])

    @pl.when(k < nk - 1)
    def _():
        acc_ref[...] = total

    # Fused epilogue on the final K step: no acc store + reload.
    @pl.when(k == nk - 1)
    def _():
        y = total + b_ref[...].astype(jnp.float32)
        o_ref[...] = _gelu_f32(y, approximate).astype(o_ref.dtype)


def _vmem_caps():
    """(tile-footprint budget, vmem_limit_bytes) sized for the actual chip."""
    try:
        cap = int(pltpu.get_tpu_info().vmem_capacity_bytes)
    except Exception:
        cap = 64 << 20  # conservative: v7x TensorCore VMEM
    cap = max(cap, 32 << 20)
    budget = max(cap - (24 << 20), cap // 2)        # ~40 MiB v7x, ~104 MiB v5e/v6e
    limit = min(cap, max(cap - (16 << 20), budget + (4 << 20)))
    return budget, limit


def _choose_config(M, N, K, cdt_size, out_size, budget):
    sub = {4: 8, 2: 16, 1: 32}.get(cdt_size, 8)

    def fk_bytes(tm, tn):
        # Pallas double-buffers every BlockSpec operand.
        return (2 * tm * K * cdt_size + 2 * K * tn * cdt_size
                + 2 * tm * tn * out_size + 2 * tn * 4)

    # ---- full-K mode: prefer W fully resident (tn = N -> W read from HBM once)
    tn_cands = [N] + [t for t in (1024, 512, 256, 128) if t < N]
    tm_cands = (1024, 512, 256, 128)   # keep tm >= 128 for decent MXU shapes
    for tn in tn_cands:
        for cand in tm_cands:
            tm = min(_round_up(M, sub), cand)
            if fk_bytes(tm, tn) <= budget:
                # Keep >=2 parallel grid blocks when cheap (v7x has 2 TCs).
                if _cdiv(M, tm) == 1 and _cdiv(N, tn) == 1:
                    if M >= 2 * sub:
                        tm = _round_up(_cdiv(M, 2), sub)
                    elif tn >= 256 and tn % 256 == 0:
                        tn = tn // 2
                return {"mode": "full_k", "tm": tm, "tn": tn}

    # ---- tiled-K fallback (very large K and/or N): 256-aligned fat tiles ----
    tm = min(_round_up(M, sub), 512)
    tn = min(_round_up(N, 128), 512)
    tk = min(_round_up(K, 256), 1024)

    def tk_bytes(tm_, tn_, tk_):
        return (2 * (tm_ * tk_ + tk_ * tn_) * cdt_size
                + 2 * tm_ * tn_ * out_size + tm_ * tn_ * 4 + 2 * tn_ * 4)

    while tk > 256 and tk_bytes(tm, tn, tk) > budget:
        tk //= 2
    while tm > sub and tk_bytes(tm, tn, tk) > budget:
        tm = max(sub, tm // 2)
    return {"mode": "tiled_k", "tm": tm, "tn": tn, "tk": tk}


def gelu_linear(x, w, b=None, *, approximate="none",
                compute_dtype=jnp.bfloat16, tm=None, tn=None, tk=None):
    """Pallas TPU forward of diffusers GELU: y = gelu(x @ W + b).

    x: (..., dim_in)   w: (dim_in, dim_out)   b: (dim_out,) or None
    compute_dtype: dtype fed to the MXU (default bf16; accumulation stays f32).
                   None keeps x.dtype (exact f32 path).
    Passing tk forces the tiled-K (grid-reduction) fallback.
    """
    orig_shape = x.shape
    K = orig_shape[-1]
    N = w.shape[1]
    out_dtype = x.dtype

    x2 = x.reshape(-1, K)
    M = x2.shape[0]

    if compute_dtype is not None:
        x2 = x2.astype(compute_dtype)
        w = w.astype(compute_dtype)
    cdt_size = jnp.dtype(x2.dtype).itemsize
    out_size = jnp.dtype(out_dtype).itemsize

    if b is None:
        b = jnp.zeros((N,), jnp.float32)
    bias2 = b.reshape(1, N).astype(jnp.float32)

    budget, vmem_limit = _vmem_caps()
    cfg = _choose_config(M, N, K, cdt_size, out_size, budget)

    mode = "tiled_k" if tk is not None else cfg["mode"]
    tm = tm or cfg["tm"]
    tn = tn or cfg["tn"]
    kernel_kwargs = dict(approximate=approximate)

    if mode == "full_k":
        mb, nb = _cdiv(M, tm), _cdiv(N, tn)
        grid = (nb, mb)   # N-blocks outer, M-blocks inner -> W block constant over i
        cost = pl.CostEstimate(
            flops=2 * M * N * K,
            transcendentals=M * N,
            bytes_accessed=int(nb * M * K * cdt_size + K * N * cdt_size
                               + nb * N * 4 + M * N * out_size))
        out = pl.pallas_call(
            functools.partial(_gelu_linear_kernel, **kernel_kwargs),
            out_shape=jax.ShapeDtypeStruct((M, N), out_dtype),
            grid_spec=pltpu.PrefetchScalarGridSpec(
                num_scalar_prefetch=0,
                grid=grid,
                in_specs=[
                    # x streams; if its DMA is ever exposed on v7x, a
                    # pipeline_mode=pl.Buffered(3) sweep on this spec is the knob.
                    pl.BlockSpec((tm, K), lambda j, i: (i, 0)),
                    pl.BlockSpec((K, tn), lambda j, i: (0, j)),   # resident W chunk
                    pl.BlockSpec((1, tn), lambda j, i: (0, j)),   # bias
                ],
                out_specs=pl.BlockSpec((tm, tn), lambda j, i: (i, j)),
            ),
            compiler_params=pltpu.CompilerParams(
                dimension_semantics=("parallel", "parallel"),
                vmem_limit_bytes=int(vmem_limit)),
            cost_estimate=cost,
        )(x2, w, bias2)
    else:
        tk = tk or cfg.get("tk") or min(_round_up(K, 256), 1024)
        # K MUST be exactly zero padded: edge-block contents along the
        # reduction axis are not guaranteed zero and would corrupt the acc.
        Kp = _round_up(K, tk)
        if Kp != K:
            x2 = jnp.pad(x2, ((0, 0), (0, Kp - K)))
            w = jnp.pad(w, ((0, Kp - K), (0, 0)))
        mb, nb, kb = _cdiv(M, tm), _cdiv(N, tn), Kp // tk
        cost = pl.CostEstimate(
            flops=2 * M * N * Kp,
            transcendentals=M * N,
            bytes_accessed=int(nb * M * Kp * cdt_size + mb * Kp * N * cdt_size
                               + mb * nb * tn * 4 + M * N * out_size))
        out = pl.pallas_call(
            functools.partial(_gelu_linear_acc_kernel, **kernel_kwargs),
            out_shape=jax.ShapeDtypeStruct((M, N), out_dtype),
            grid_spec=pltpu.PrefetchScalarGridSpec(
                num_scalar_prefetch=0,
                grid=(mb, nb, kb),
                in_specs=[
                    pl.BlockSpec((tm, tk), lambda i, j, k: (i, k)),
                    pl.BlockSpec((tk, tn), lambda i, j, k: (k, j)),
                    pl.BlockSpec((1, tn), lambda i, j, k: (0, j)),
                ],
                out_specs=pl.BlockSpec((tm, tn), lambda i, j, k: (i, j)),
                scratch_shapes=[pltpu.VMEM((tm, tn), jnp.float32)],
            ),
            compiler_params=pltpu.CompilerParams(
                dimension_semantics=("parallel", "parallel", "arbitrary"),
                vmem_limit_bytes=int(vmem_limit)),
            cost_estimate=cost,
        )(x2, w, bias2)

    return out.reshape(*orig_shape[:-1], N)


if __name__ == "__main__":
    key = jax.random.PRNGKey(0)

    # --- test 1: exact GELU, f32 compute (tight tolerance), full-K path -----
    batch, seq, dim_in, dim_out = 2, 8, 32, 32
    kx, kw, kb = jax.random.split(key, 3)
    x = jax.random.normal(kx, (batch, seq, dim_in), dtype=jnp.float32)
    bound = 1.0 / math.sqrt(dim_in)
    w = jax.random.uniform(kw, (dim_in, dim_out), jnp.float32, -bound, bound)
    bias = jax.random.uniform(kb, (dim_out,), jnp.float32, -bound, bound)

    out = jax.block_until_ready(
        gelu_linear(x, w, bias, approximate="none", compute_dtype=None))
    ref = jax.nn.gelu(
        jnp.matmul(x, w, precision=lax.Precision.HIGHEST) + bias, approximate=False)
    assert out.shape == (batch, seq, dim_out)
    assert jnp.allclose(out, ref, atol=1e-5, rtol=1e-5), "exact f32 path mismatch"

    # --- test 2: tanh GELU, default bf16 MXU operands, ragged M/N edges -----
    batch2, seq2, dim_in2, dim_out2 = 2, 20, 48, 96
    kx2, kw2, kb2 = jax.random.split(jax.random.PRNGKey(1), 3)
    x2 = jax.random.normal(kx2, (batch2, seq2, dim_in2), dtype=jnp.float32)
    bound2 = 1.0 / math.sqrt(dim_in2)
    w2 = jax.random.uniform(kw2, (dim_in2, dim_out2), jnp.float32, -bound2, bound2)
    bias2 = jax.random.uniform(kb2, (dim_out2,), jnp.float32, -bound2, bound2)

    out2 = jax.block_until_ready(gelu_linear(x2, w2, bias2, approximate="tanh"))
    ref2 = jax.nn.gelu(
        jnp.matmul(x2, w2, precision=lax.Precision.HIGHEST) + bias2, approximate=True)
    assert out2.shape == (batch2, seq2, dim_out2)
    assert jnp.allclose(out2, ref2, atol=2e-2, rtol=2e-2), "bf16 path mismatch"

    # --- test 3: forced tiled-K fallback (grid reduction + fused epilogue) --
    batch3, seq3, dim_in3, dim_out3 = 2, 24, 160, 64
    kx3, kw3, kb3 = jax.random.split(jax.random.PRNGKey(2), 3)
    x3 = jax.random.normal(kx3, (batch3, seq3, dim_in3), dtype=jnp.float32)
    bound3 = 1.0 / math.sqrt(dim_in3)
    w3 = jax.random.uniform(kw3, (dim_in3, dim_out3), jnp.float32, -bound3, bound3)
    bias3 = jax.random.uniform(kb3, (dim_out3,), jnp.float32, -bound3, bound3)

    out3 = jax.block_until_ready(
        gelu_linear(x3, w3, bias3, approximate="none", compute_dtype=None, tk=128))
    ref3 = jax.nn.gelu(
        jnp.matmul(x3, w3, precision=lax.Precision.HIGHEST) + bias3, approximate=False)
    assert out3.shape == (batch3, seq3, dim_out3)
    assert jnp.allclose(out3, ref3, atol=1e-5, rtol=1e-5), "tiled-K path mismatch"

    print("KERNEL_OK")
</pallas_src>

<mosaic_0001>
module attributes {stable_mosaic.version = 11 : i64} {
  func.func @_gelu_linear_kernel(%arg0: i32, %arg1: i32, %arg2: memref<8x32xf32, #tpu.memory_space<vmem>>, %arg3: memref<32x32xf32, #tpu.memory_space<vmem>>, %arg4: memref<1x32xf32, #tpu.memory_space<vmem>>, %arg5: memref<8x32xf32, #tpu.memory_space<vmem>>) attributes {dimension_semantics = [#tpu.dimension_semantics<parallel>, #tpu.dimension_semantics<parallel>], iteration_bounds = array<i64: 1, 2>, scalar_prefetch = 0 : i64, scratch_operands = 0 : i64, tpu.core_type = #tpu.core_type<tc>, window_params = [{transform_indices = @transform_0, window_bounds = array<i64: 8, 32>}, {transform_indices = @transform_1, window_bounds = array<i64: 32, 32>}, {transform_indices = @transform_2, window_bounds = array<i64: 1, 32>}, {transform_indices = @transform_3, window_bounds = array<i64: 8, 32>}]} {
    %c0 = arith.constant 0 : index
    %c0_0 = arith.constant 0 : index
    %0 = vector.load %arg2[%c0, %c0_0] : memref<8x32xf32, #tpu.memory_space<vmem>>, vector<8x32xf32>
    %c0_1 = arith.constant 0 : index
    %c0_2 = arith.constant 0 : index
    %1 = vector.load %arg3[%c0_1, %c0_2] : memref<32x32xf32, #tpu.memory_space<vmem>>, vector<32x32xf32>
    %cst = arith.constant dense<0.000000e+00> : vector<8x32xf32>
    %2 = tpu.matmul %0, %1, %cst {dimension_numbers = #tpu.dot_dimension_numbers<[1], [0], [0], [1], [0, 0, 1, 1], [], []>, precision = #tpu.contract_precision<fp32>} : vector<8x32xf32>, vector<32x32xf32>, vector<8x32xf32> -> vector<8x32xf32>
    %c0_3 = arith.constant 0 : index
    %c0_4 = arith.constant 0 : index
    %3 = vector.load %arg4[%c0_3, %c0_4] : memref<1x32xf32, #tpu.memory_space<vmem>>, vector<1x32xf32>
    %4 = vector.broadcast %3 : vector<1x32xf32> to vector<8x32xf32>
    %5 = arith.addf %2, %4 : vector<8x32xf32>
    %cst_5 = arith.constant 5.000000e-01 : f32
    %6 = vector.broadcast %cst_5 : f32 to vector<8x32xf32>
    %7 = arith.mulf %6, %5 : vector<8x32xf32>
    %cst_6 = arith.constant 0.707106769 : f32
    %8 = vector.broadcast %cst_6 : f32 to vector<8x32xf32>
    %9 = arith.mulf %5, %8 : vector<8x32xf32>
    %10 = math.erf %9 : vector<8x32xf32>
    %cst_7 = arith.constant 1.000000e+00 : f32
    %11 = vector.broadcast %cst_7 : f32 to vector<8x32xf32>
    %12 = arith.addf %11, %10 : vector<8x32xf32>
    %13 = arith.mulf %7, %12 : vector<8x32xf32>
    %c0_8 = arith.constant 0 : index
    %c0_9 = arith.constant 0 : index
    %14 = vector.load %arg5[%c0_8, %c0_9] : memref<8x32xf32, #tpu.memory_space<vmem>>, vector<8x32xf32>
    tpu.vector_store %arg5[%c0_8, %c0_9], %13 {strides = array<i32>} : memref<8x32xf32, #tpu.memory_space<vmem>>, vector<8x32xf32>,
    return
  }
  func.func @transform_0(%arg0: i32, %arg1: i32) -> (i32, i32) {
    %c0_i32 = arith.constant 0 : i32
    %c0_i32_0 = arith.constant 0 : i32
    return %arg1, %c0_i32 : i32, i32
  }
  func.func @transform_1(%arg0: i32, %arg1: i32) -> (i32, i32) {
    %c0_i32 = arith.constant 0 : i32
    %c0_i32_0 = arith.constant 0 : i32
    return %c0_i32, %arg0 : i32, i32
  }
  func.func @transform_2(%arg0: i32, %arg1: i32) -> (i32, i32) {
    %c0_i32 = arith.constant 0 : i32
    %c0_i32_0 = arith.constant 0 : i32
    return %c0_i32, %arg0 : i32, i32
  }
  func.func @transform_3(%arg0: i32, %arg1: i32) -> (i32, i32) {
    %c0_i32 = arith.constant 0 : i32
    return %arg1, %arg0 : i32, i32
  }
}

</mosaic_0001>

<bundles_post_ra>
// kernel: tpu_custom_call.1
= control target key start
LH: loop header
LB: loop body
LE: loop exit
PB: predicated region body
PF: predicated region fallthrough
CT: control target
= control target key end

     0   :  { %8 = vsyncpa [#allocation3], 0  ;;  %s1462_s0 = inlined_call_operand.hbm [shape: f32[16,32], index: 0, kind: input, shape index: {}]   ;;  %s1463_s1 = inlined_call_operand.hbm [shape: f32[32,32], index: 1, kind: input, shape index: {}]   ;;  %s1464_s2 = inlined_call_operand.vmem [shape: f32[1,32], index: 2, kind: input, shape index: {}]   ;;  %s1465_s3 = inlined_call_operand.hbm [shape: f32[16,32], index: 3, kind: output, shape index: {}]  }
   0x1   :  { %10 = vsyncpa [#allocation3 + $0x1], 0 }
   0x2   :  { %11 = vsyncpa [#allocation6], 0 }
   0x3   :  { %12 = vsyncpa [#allocation4], 0 }
   0x4   :  { %14 = vsyncpa [#allocation4 + $0x1], 0  ;;  %s1220_s12 = smov 0   ;;  %s1222_s13 = smov 0  }
   0x5   :  { %s1224_s14 = smov 0   ;;  %s1226_s15 = smov 0  }
   0x6   :  { %s1228_s16 = smov 0   ;;  %s1230_s17 = smov 0  }
   0x7 LB: > { %s861_s18 = sadd.s32 4294967295, %s1191_s17   ;;  %s862_s19 = sadd.s32 4294967294, %s1191_s17   ;;  %s1191_s17 = sphi %s1230_s17, %s20_s17   ;;  %s1187_s16 = sphi %s1228_s16, %s1483_s16   ;;  %s1183_s15 = sphi %s1226_s15, %s1482_s15   ;;  %s1179_s14 = sphi %s1224_s14, %s1481_s14   ;;  %s1175_s13 = sphi %s1222_s13, %s1480_s13   ;;  %s1171_s12 = sphi %s1220_s12, %s1479_s12  }
   0x8   : > { %p52_p0 = scmp.ne.s32.totalorder %s1175_s13, %s1171_s12  ;;  %p1254_p1 = scmp.eq.s32.totalorder %s861_s18, 0 }
   0x9   : > { %p1258_p2 = scmp.eq.s32.totalorder %s861_s18, 1  ;;  %p136_p3 = scmp.eq.s32.totalorder %s862_s19, 1 }
   0xa   : > { %p1264_p4 = por %p1254_p1, %p52_p0  ;;  %p863_p5 = scmp.ge.s32.totalorder %s1191_s17, 1 }
   0xb   : > { %p1269_p6 = por %p136_p3, %p52_p0  ;;  %p143_p7 = scmp.lt.s32.totalorder %s1191_s17, 3 }
   0xc   : > { %s1469_s22 = scalar_select %p1264_p4, 1, 0 }
   0xd   : > { %s1470_s23 = scalar_select %p1269_p6, 1, 0 }
   0xe   : > { %p1274_p8 = pnand %p863_p5, %p143_p7  ;;  %s1193_s25 = smov [#allocation5]  }
   0xf   : > { %s157_s26 = sshll.u32 %s1193_s25, 4  ;;  %s29_s28 = sadd.s32 1, %s1187_s16  ;;  %s158_s26 = int_to_ptr.vmem [resolvable:$true] %s157_s26 }
  0x10   : > { %p982_p9 = pneg %p1274_p8  ;;  %s1064_s29 = scalar_lea.vmem %s158_s26, 512 }
  0x11   : > { %p1065_p13 = scmp.ne.s32.totalorder %s158_s26, %s1064_s29  ;;  %p1072_p5 = scmp.lt.s32.totalorder %s158_s26, %s158_s26 }
  0x12   : > { %p1283_p11 = pnand %p982_p9, %p1254_p1  ;;  %p1073_p7 = scmp.lt.s32.totalorder %s1064_s29, %s1064_s29 }
  0x14   : > { %p1055_p12 = pneg %p1283_p11  ;;  %p1074_p6 = por %p1073_p7, %p1072_p5 }
  0x16   : > { %p1067_p0 = pnand %p1065_p13, %p1055_p12 }
  0x18   : > { %p1068_p3 = pneg %p1067_p0 }
  0x1a   : > { %p1075_p4 = pnand %p1074_p6, %p1068_p3 }
  0x1c   : > { %1078 = shalt.err (!%p1075_p4)
}
  0x1d   : > { %s1194_s30 = smov 128   ;;  %s1195_s4 = smov 8  }
  0x1e   : > { %985 = dma.hbm_to_vmem [thread:$0]  (!%p1283_p11), %s1463_s1, 512, %s158_s26, [#allocation6], %s1194_s30, %s1194_s30, %s1195_s4  }
  0x1f   : > { %p30_p6 = scmp.ge.s32.totalorder %s29_s28, 2  ;;  %s39_s7 = sadd.s32 1, %s1179_s14 }
  0x20   : > { %p46_p4 = scmp.ne.s32.totalorder %s1179_s14, %s1175_s13  ;;  %p47_p9 = scmp.eq.s32.totalorder %s1191_s17, 0 }
  0x21   : > { %s1485_s28 = smov (%p30_p6, %s29_s28), 0  ;;  %p995_p0 = scmp.lt.s32.totalorder %s1191_s17, 2 }
  0x22   : > { %p1301_p12 = por %p47_p9, %p46_p4  ;;  %p1307_p13 = por %p1258_p2, %p46_p4 }
  0x23   : > { %s36_s10 = ssub.s32 %s1187_s16, %s1485_s28  ;;  %s177_s11 = sand.u32 1, %s1179_s14  }
  0x24   : > { %p37_p11 = scmp.eq.s32.totalorder %s36_s10, 0  ;;  %s867_s18 = sshll.u32 %s177_s11, 3 }
  0x25   : > { %s868_s25 = sshll.u32 %s1187_s16, 7  ;;  %s181_s30 = scalar_lea.vmem [#allocation2], %s867_s18 }
  0x26   : > { %s1316_s19 = scalar_select %p37_p11, %s1179_s14, %s39_s7  }
  0x27   : > { %s186_s29 = scalar_lea.hbm %s1462_s0, %s868_s25  ;;  %s188_s4 = sshll.u32 %s181_s30, 4  ;;  %s189_s4 = int_to_ptr.vmem [resolvable:$true] %s188_s4 }
  0x28   : > { %p1324_p2 = pnand %p995_p0, %p1301_p12  ;;  %s178_s5 = scalar_lea.sflag [#allocation3], %s177_s11 }
  0x29   : > { %s1092_s6 = scalar_lea.vmem %s189_s4, 128  ;;  %s1196_s7 = smov [#allocation2]  }
  0x2a   : > { %p1081_p3 = pneg %p1324_p2  ;;  %p1093_p5 = scmp.ne.s32.totalorder %s189_s4, %s1092_s6 }
  0x2b   : > { %s1097_s10 = sshll.u32 %s1196_s7, 4  ;;  %s1098_s10 = int_to_ptr.vmem [resolvable:$false] %s1097_s10 }
  0x2c   : > { %p1095_p7 = pnand %p1093_p5, %p1081_p3  ;;  %s1099_s25 = scalar_lea.vmem %s1098_s10, 256 }
  0x2d   : > { %p1100_p4 = scmp.lt.s32.totalorder %s189_s4, %s1098_s10  ;;  %p1101_p9 = scmp.lt.s32.totalorder %s1099_s25, %s1092_s6 }
  0x2e   : > { %p1096_p6 = pneg %p1095_p7 }
  0x2f   : > { %p1102_p11 = por %p1101_p9, %p1100_p4 }
  0x31   : > { %p1103_p10 = pnand %p1102_p11, %p1096_p6 }
  0x33   : > { %1106 = shalt.err (!%p1103_p10)
}
  0x34   : > { %989 = dma.hbm_to_vmem [thread:$0]  (!%p1324_p2), %s186_s29, 128, %s189_s4, %s178_s5  }
  0x35   : > { %197 = sbr.rel (%p1274_p8) target bundleno = 327 (0x147), region = 32  ;;  %s1335_s8 = sand.u32 (!%p1274_p8), 1, %s1175_s13  }
  0x36   : > { %s870_s11 = sshll.u32 (!%p1274_p8), %s1335_s8, 3  ;;  %s200_s18 = scalar_lea.sflag (!%p1274_p8), [#allocation3], %s1335_s8 }
  0x37   : > { %s203_s26 = scalar_lea.vmem (!%p1274_p8), [#allocation2], %s870_s11  ;;  %p1476_p12 = scmp.ne.s32.totalorder (!%p1274_p8), %s1469_s22, 0 }
  0x3a   : > { %1158 = dma.done.wait (%p1476_p12), %s200_s18, 128  }
  0x3b   : > { %1160 = vsyncadd (%p1476_p12), %s200_s18, 4294967168 }
  0x3c   : > { %1162 = dma.done.wait (%p1254_p1), [#allocation6], 512  }
  0x3d   : > { %1164 = vsyncadd (%p1254_p1), [#allocation6], 4294966784  ;;  %v1197_v0 = vmov 0.0   ;;  %vm1198_vm0 = vmmov 0   ;;  %vm248_vm1 = vcmask 261120   ;;  %v240_v1 = vld [vmem:[#allocation5 + $0x18] sm:$0xff] }
  0x3e   : > { %908 = vmatprep.subr.mxu0 %v1197_v0  ;;  %919 = vmatprep.subr.mxu1 %v1197_v0  ;;  %v239_v2 = vld [vmem:[#allocation5 + $0x10] sm:$0xff]  ;;  %v238_v3 = vld [vmem:[#allocation5 + $0x8] sm:$0xff]  ;;  %v1355_v4 = vand.u32 4294901760, %v240_v1  ;;  %v237_v7 = vld [vmem:[#allocation5] sm:$0xff]  ;;  %s875_s24 = sshll.u32 %s1183_s15, 7  ;;  %s232_s27 = scalar_lea.vmem [#allocation7], %s870_s11 }
  0x3f   : > { %916 = vmatprep.mubr.msk.f32.mxu0 %vm1198_vm0, %v1197_v0  ;;  %927 = vmatprep.mubr.msk.f32.mxu1 %vm1198_vm0, %v1197_v0  ;;  %v1357_v5 = vand.u32 4294901760, %v239_v2  ;;  %v1359_v6 = vand.u32 4294901760, %v238_v3  ;;  %v236_v8 = vld [vmem:[%s203_s26] sm:$0xff]  ;;  %v1361_v9 = vand.u32 4294901760, %v237_v7  ;;  %s758_s29 = sshll.u32 %s232_s27, 4  ;;  %s756_s21 = scalar_lea.hbm %s1465_s3, %s875_s24  ;;  %s759_s29 = int_to_ptr.vmem [resolvable:$true] %s758_s29 }
  0x40   : > { %v250_v10 = vsel %vm248_vm1, %v236_v8, 0  ;;  %909 = vmatpush3.msra.mxu0 %v1355_v4  ;;  %v357_v11 = vsub.f32 %v240_v1, %v1355_v4  ;;  %v873_v35 = vld [vmem:[%s1464_s2] ss:$0 sm:$0xff]  ;;  %s744_s5 = scalar_lea.sflag [#allocation4], %s1335_s8  ;;  %s1107_s6 = scalar_lea.vmem %s759_s29, 128 }
  0x41   : > { %v1366_v12 = vand.u32 4294901760, %v250_v10  ;;  %v364_v13 = vsub.f32 %v239_v2, %v1357_v5  ;;  %v371_v14 = vsub.f32 %v238_v3, %v1359_v6  ;;  %910 = vmatprep.subr.mxu0 %v1197_v0  ;;  %v378_v15 = vsub.f32 %v237_v7, %v1361_v9  ;;  %p1108_p1 = scmp.ne.s32.totalorder %s759_s29, %s1107_s6  ;;  %s1199_s15 = smov [#allocation7]  }
  0x42   : > { %911 = vmatpush3.msra.mxu0 %v1357_v5  ;;  %v358_v16 = vand.u32 4294901760, %v357_v11  ;;  %s1111_s7 = sshll.u32 %s1199_s15, 4  ;;  %s1112_s7 = int_to_ptr.vmem [resolvable:$false] %s1111_s7 }
  0x43   : > { %v322_v17 = vsub.f32 %v250_v10, %v1366_v12  ;;  %v365_v18 = vand.u32 4294901760, %v364_v13  ;;  %v372_v19 = vand.u32 4294901760, %v371_v14  ;;  %912 = vmatprep.subr.mxu0 %v1197_v0  ;;  %v379_v20 = vand.u32 4294901760, %v378_v15  ;;  %p1109_p8 = pnand %p1108_p1, %p1307_p13  ;;  %s1113_s10 = scalar_lea.vmem %s1112_s7, 256 }
  0x44   : > { %913 = vmatpush3.msra.mxu0 %v1359_v6  ;;  %v359_v21 = vsub.f32 %v357_v11, %v358_v16  ;;  %p1114_p0 = scmp.lt.s32.totalorder %s759_s29, %s1112_s7  ;;  %p1115_p2 = scmp.lt.s32.totalorder %s1113_s10, %s1107_s6 }
  0x45   : > { %v323_v22 = vand.u32 4294901760, %v322_v17  ;;  %v366_v23 = vsub.f32 %v364_v13, %v365_v18  ;;  %v373_v24 = vsub.f32 %v371_v14, %v372_v19  ;;  %914 = vmatprep.subr.mxu0 %v1197_v0  ;;  %v380_v28 = vsub.f32 %v378_v15, %v379_v20  ;;  %p1110_p10 = pneg %p1109_p8 }
  0x46   : > { %915 = vmatpush3.msra.mxu0 %v1361_v9  ;;  %v360_v25 = vand.u32 4294901760, %v359_v21  ;;  %p1116_p3 = por %p1115_p2, %p1114_p0 }
  0x47   : > { %v324_v26 = vsub.f32 %v322_v17, %v323_v22  ;;  %v367_v27 = vand.u32 4294901760, %v366_v23  ;;  %930 = vmatprep.subr.mxu0 %v1197_v0  ;;  %v374_v30 = vand.u32 4294901760, %v373_v24  ;;  %v381_v31 = vand.u32 4294901760, %v380_v28 }
  0x48   : > { %920 = vmatpush3.msra.mxu1 %v360_v25  ;;  %p1117_p5 = pnand %p1116_p3, %p1110_p10 }
  0x49   : > { %v325_v29 = vand.u32 4294901760, %v324_v26  ;;  %921 = vmatprep.subr.mxu1 %v1197_v0 }
  0x4a   : > { %922 = vmatpush3.msra.mxu1 %v367_v27 }
  0x4b   : > { %917 = vmatmul.mubr.f32.vlgmr.msra.gmra.mxu0 %v325_v29  ;;  %923 = vmatprep.subr.mxu1 %v1197_v0 }
  0x4c   : > { %931 = vmatpush3.msra.mxu0 %v357_v11  ;;  %924 = vmatpush3.msra.mxu1 %v374_v30 }
  0x4d   : > { %932 = vmatprep.subr.mxu0 %v1197_v0  ;;  %925 = vmatprep.subr.mxu1 %v1197_v0 }
  0x4e   : > { %933 = vmatpush3.msra.mxu0 %v364_v13  ;;  %926 = vmatpush3.msra.mxu1 %v381_v31 }
  0x4f   : > { %934 = vmatprep.subr.mxu0 %v1197_v0  ;;  %928 = vmatmul.mubr.f32.vlgmr.msra.gmra.mxu1 %v1366_v12 }
  0x50   : > { %935 = vmatpush3.msra.mxu0 %v371_v14  ;;  %941 = vmatprep.subr.mxu1 %v1197_v0 }
  0x51   : > { %936 = vmatprep.subr.mxu0 %v1197_v0  ;;  %942 = vmatpush3.msra.mxu1 %v1355_v4 }
  0x52   : > { %937 = vmatpush3.msra.mxu0 %v378_v15  ;;  %938 = vmatprep.mubr.msk.f32.mxu0 %vm1198_vm0, %v1197_v0 }
  0x53   : > { %943 = vmatprep.subr.mxu1 %v1197_v0  ;;  %952 = vmatprep.subr.mxu0 %v1197_v0 }
  0x54   : > { %939 = vmatmul.mubr.f32.vlgmr.msra.gmra.mxu0 %v322_v17  ;;  %944 = vmatpush3.msra.mxu1 %v1357_v5 }
  0x55   : > { %953 = vmatpush3.msra.mxu0 %v358_v16  ;;  %945 = vmatprep.subr.mxu1 %v1197_v0 }
  0x56   : > { %954 = vmatprep.subr.mxu0 %v1197_v0  ;;  %946 = vmatpush3.msra.mxu1 %v1359_v6 }
  0x57   : > { %955 = vmatpush3.msra.mxu0 %v365_v18  ;;  %947 = vmatprep.subr.mxu1 %v1197_v0 }
  0x58   : > { %956 = vmatprep.subr.mxu0 %v1197_v0  ;;  %948 = vmatpush3.msra.mxu1 %v1361_v9 }
  0x59   : > { %949 = vmatprep.mubr.msk.f32.mxu1 %vm1198_vm0, %v1197_v0  ;;  %957 = vmatpush3.msra.mxu0 %v372_v19 }
  0x5a   : > { %950 = vmatmul.mubr.f32.vlgmr.msra.gmra.mxu1 %v323_v22  ;;  %958 = vmatprep.subr.mxu0 %v1197_v0 }
  0x5b   : > { %963 = vmatprep.subr.mxu1 %v1197_v0  ;;  %959 = vmatpush3.msra.mxu0 %v379_v20 }
  0x5c   : > { %960 = vmatprep.mubr.msk.f32.mxu0 %vm1198_vm0, %v1197_v0  ;;  %964 = vmatpush3.msra.mxu1 %v1355_v4 }
  0x5d   : > { %961 = vmatmul.mubr.f32.vlgmr.msra.gmra.mxu0 %v1366_v12  ;;  %965 = vmatprep.subr.mxu1 %v1197_v0 }
  0x5e   : > { %971 = vmatprep.mubr.msk.f32.mxu1 %vm1198_vm0, %v1197_v0  ;;  %966 = vmatpush3.msra.mxu1 %v1357_v5 }
  0x5f   : > { %967 = vmatprep.subr.mxu1 %v1197_v0 }
  0x60   : > { %968 = vmatpush3.msra.mxu1 %v1359_v6 }
  0x61   : > { %969 = vmatprep.subr.mxu1 %v1197_v0 }
  0x62   : > { %970 = vmatpush3.msra.mxu1 %v1361_v9 }
  0x63   : > { %972 = vmatmul.mubr.f32.vlgmr.msra.gmra.mxu1 %v1366_v12 }
 0x10b   : > { %v327_v32 = vpop.f32.mrf.mxu0 }
 0x10c   : > { %v328_v38 = vadd.f32 %v873_v35, %v327_v32 }
 0x10d   : > { %v918_v33 = vpop.f32.mrf.mxu0 }
 0x10f   : > { %v418_v34 = vpop.f32.mrf.mxu1 }
 0x110   : > { %v419_v40 = vadd.f32 %v418_v34, %v328_v38 }
 0x111   : > { %v929_v36 = vpop.f32.mrf.mxu1 }
 0x114   : > { %v498_v37 = vpop.f32.mrf.mxu0 }
 0x115   : > { %v499_v43 = vadd.f32 %v498_v37, %v419_v40 }
 0x116   : > { %v940_v39 = vpop.f32.mrf.mxu0 }
 0x11a   : > { %v575_v41 = vpop.f32.mrf.mxu1 }
 0x11b   : > { %v576_v45 = vadd.f32 %v575_v41, %v499_v43 }
 0x11c   : > { %v951_v42 = vpop.f32.mrf.mxu1 }
 0x11d   : > { %v658_v44 = vpop.f32.mrf.mxu0 }
 0x11e   : > { %v659_v47 = vadd.f32 %v658_v44, %v576_v45 }
 0x11f   : > { %v962_v46 = vpop.f32.mrf.mxu0 }
 0x123   : > { %v733_v48 = vpop.f32.mrf.mxu1 }
 0x124   : > { %v734_v49 = vadd.f32 %v733_v48, %v659_v47 }
 0x125   : > { %v973_v50 = vpop.f32.mrf.mxu1 }
 0x126   : > { %v738_v51 = vmul.f32 0.70710677, %v734_v49  ;;  %v737_v53 = vmul.f32 0.5, %v734_v49 }
 0x128   : > { %1051 = verf.f32 %v738_v51 }
 0x135   : > { %v1052_v52 = vpop.eup %1051 }
 0x136   : > { %v740_v54 = vadd.f32 1.0, %v1052_v52 }
 0x138   : > { %v741_v55 = vmul.f32 %v740_v54, %v737_v53 }
 0x13a   : > { %742 = vst.msk [vmem:[%s232_s27] sm:$0xff] %vm248_vm1, %v741_v55 }
 0x13b   : > { %1120 = shalt.err (!%p1117_p5)
}
 0x13c   : > { %s1121_s25 = scalar_lea.hbm %s756_s21, 128  ;;  %s1125_s18 = scalar_lea.hbm %s1465_s3, 256 }
 0x13d   : > { %p1122_p7 = scmp.ne.s32.totalorder %s756_s21, %s1121_s25  ;;  %p1126_p9 = scmp.lt.s32.totalorder %s756_s21, %s1465_s3 }
 0x13e   : > { %p1127_p11 = scmp.lt.s32.totalorder %s1125_s18, %s1121_s25 }
 0x13f   : > { %p1123_p6 = pnand %p1122_p7, %p1307_p13 }
 0x140   : > { %p1128_p12 = por %p1127_p11, %p1126_p9 }
 0x141   : > { %p1124_p4 = pneg %p1123_p6 }
 0x143   : > { %p1129_p1 = pnand %p1128_p12, %p1124_p4 }
 0x145   : > { %1132 = shalt.err (!%p1129_p1)
}
 0x146   : > { %980 = dma.vmem_to_hbm [thread:$0]  (%p1307_p13), %s759_s29, 128, %s756_s21, %s744_s5  }
 0x147 PF: > { %s770_s22 = sand.u32 1, %s1171_s12   ;;  %p1477_p8 = scmp.ne.s32.totalorder %s1470_s23, 0 }
 0x148   : > { %p1478_p10 = scmp.ge.s32.totalorder %s1191_s17, 2  ;;  %s771_s24 = scalar_lea.sflag [#allocation4], %s770_s22 }
 0x14a   : > { %p991_p0 = pnand %p1478_p10, %p1477_p8 }
 0x14c   : > { %p992_p2 = pneg %p991_p0 }
 0x14e   : > { %1166 = dma.done.wait (%p992_p2), %s771_s24, 128  }
 0x14f   : > { %1168 = vsyncadd (%p992_p2), %s771_s24, 4294967168  ;;  %s20_s17 = sadd.s32 1, %s1191_s17   ;;  %s1479_s12 = smov %s1175_s13 }
 0x150   : > { %p17_p3 = scmp.ge.s32.totalorder %s20_s17, 4   ;;  %s1480_s13 = smov %s1179_s14 }
 0x151   : > { %s1481_s14 = smov %s1316_s19  ;;  %s1482_s15 = smov %s1187_s16 }
 0x152   : > { %s1483_s16 = smov %s1485_s28  ;;  %19 = sbr.rel (!%p17_p3) target bundleno = 7 (0x7), region = 85 }
 0x157   :  { %776 = vsyncpa [#allocation3], 1 }
 0x158   :  { %778 = vsyncpa [#allocation3 + $0x1], 1 }
 0x159   :  { %779 = vsyncpa [#allocation6], 1 }
 0x15a   :  { %780 = vsyncpa [#allocation4], 1 }
 0x15b   :  { %782 = vsyncpa [#allocation4 + $0x1], 1 }

</bundles_post_ra>
